<compile_context>
chip_gen: v5e
topology: v5e:2x2
jax: 0.10.0
libtpu: 0.0.40
codegen_flags: <defaults>
</compile_context>

<pallas_src>
import jax
import jax.numpy as jnp
from jax.experimental import pallas as pl
from jax.experimental.pallas import tpu as pltpu

DATA_DIM = 302
OUT_LAYER_SIZE = 8
HIDDEN = (64, 32, 16)
BLOCK_B = 4096  # batch tile; f32 x double-buffer at 4096 fits in 32 MiB VMEM


def mlp_kernel(x_ref, w1_ref, b1_ref, w2_ref, b2_ref, w3_ref, b3_ref,
               w4_ref, b4_ref, o_ref):
    """One batch tile: 4 fused matmul+bias+ReLU layers (MXU + VPU).

    x arrives f32 (single HBM pass) and is cast to the bf16 weight dtype at
    the MXU input; all accumulation is f32; activations are cast back to the
    weight dtype before each subsequent MXU matmul.
    """
    h = jnp.dot(x_ref[...].astype(w1_ref.dtype), w1_ref[...],
                preferred_element_type=jnp.float32)
    h = jnp.maximum(h + b1_ref[...], 0.0)

    h = jnp.dot(h.astype(w2_ref.dtype), w2_ref[...],
                preferred_element_type=jnp.float32)
    h = jnp.maximum(h + b2_ref[...], 0.0)

    h = jnp.dot(h.astype(w3_ref.dtype), w3_ref[...],
                preferred_element_type=jnp.float32)
    h = jnp.maximum(h + b3_ref[...], 0.0)

    h = jnp.dot(h.astype(w4_ref.dtype), w4_ref[...],
                preferred_element_type=jnp.float32)
    h = jnp.maximum(h + b4_ref[...], 0.0)

    o_ref[...] = h.astype(o_ref.dtype)


def _round_up(a, m):
    return ((a + m - 1) // m) * m


def sequence_forward(x, params, *, block_b=BLOCK_B,
                     compute_dtype=jnp.bfloat16, out_dtype=jnp.float32):
    """x: (B, DATA_DIM) float32. params: list of (W, b) with W=(in,out), b=(1,out).

    Returns (B, OUT_LAYER_SIZE) in `out_dtype` (float32 by default to match
    the PyTorch reference; pass bfloat16 to shave the small output write).
    """
    B = x.shape[0]
    (w1, b1), (w2, b2), (w3, b3), (w4, b4) = params

    # Weights are tiny -> one-time bf16 cast (native bf16 MXU datapath).
    # x is NOT cast or padded here (see header notes).
    ws = [w.astype(compute_dtype) for w in (w1, w2, w3, w4)]
    bs = [b.astype(jnp.float32) for b in (b1, b2, b3, b4)]

    # Batch tile: cap at ceil(B/2) (rounded up to a sublane multiple of 8) so
    # that large batches always produce >= 2 grid steps for v7x megacore
    # sharding; tiny batches collapse to a single fused step.
    half = _round_up(max(pl.cdiv(B, 2), 8), 8)
    tb = _round_up(max(min(block_b, half), 8), 8)
    grid = (pl.cdiv(B, tb),)  # ragged last tile: OOB output rows are dropped

    # Weights/biases: full-array blocks with a constant index map -> DMA'd
    # once and VMEM-resident across all batch tiles.
    def resident(arr):
        return pl.BlockSpec(arr.shape, lambda i: (0,) * arr.ndim)

    x_spec = pl.BlockSpec((tb, DATA_DIM), lambda i: (i, 0))
    out_spec = pl.BlockSpec((tb, OUT_LAYER_SIZE), lambda i: (i, 0))

    flops = 2 * B * (DATA_DIM * HIDDEN[0]
                     + HIDDEN[0] * HIDDEN[1]
                     + HIDDEN[1] * HIDDEN[2]
                     + HIDDEN[2] * OUT_LAYER_SIZE)
    bytes_accessed = (
        x.size * x.dtype.itemsize
        + sum(w.size * w.dtype.itemsize for w in ws)
        + sum(b.size * b.dtype.itemsize for b in bs)
        + B * OUT_LAYER_SIZE * jnp.dtype(out_dtype).itemsize
    )

    return pl.pallas_call(
        mlp_kernel,
        out_shape=jax.ShapeDtypeStruct((B, OUT_LAYER_SIZE), out_dtype),
        grid=grid,
        in_specs=[x_spec,
                  resident(ws[0]), resident(bs[0]),
                  resident(ws[1]), resident(bs[1]),
                  resident(ws[2]), resident(bs[2]),
                  resident(ws[3]), resident(bs[3])],
        out_specs=out_spec,
        compiler_params=pltpu.CompilerParams(
            dimension_semantics=("parallel",),     # megacore sharding on v7x
            vmem_limit_bytes=32 * 1024 * 1024),    # headroom for v5e at tb=4096
        cost_estimate=pl.CostEstimate(
            flops=flops, transcendentals=0, bytes_accessed=bytes_accessed),
    )(x, ws[0], bs[0], ws[1], bs[1], ws[2], bs[2], ws[3], bs[3])


def init_params(key):
    """Deterministic init mimicking PyTorch Linear default: U(-1/sqrt(fan_in), 1/sqrt(fan_in))."""
    dims = (DATA_DIM,) + HIDDEN + (OUT_LAYER_SIZE,)
    params = []
    for i in range(len(dims) - 1):
        fan_in, fan_out = dims[i], dims[i + 1]
        key, kw, kb = jax.random.split(key, 3)
        bound = 1.0 / jnp.sqrt(fan_in)
        W = jax.random.uniform(kw, (fan_in, fan_out), jnp.float32, -bound, bound)
        b = jax.random.uniform(kb, (1, fan_out), jnp.float32, -bound, bound)
        params.append((W, b))
    return params


def reference_forward(x, params):
    h = x
    for (W, b) in params:
        h = jnp.maximum(h @ W + b, 0.0)
    return h


if __name__ == "__main__":
    key = jax.random.PRNGKey(0)
    key, kx, kx2 = jax.random.split(key, 3)
    params = init_params(key)

    # Small batch: collapses to a single fused grid step.
    B = 8
    x = jax.random.normal(kx, (B, DATA_DIM), dtype=jnp.float32)
    out = jax.block_until_ready(sequence_forward(x, params))
    ref = reference_forward(x, params)
    assert out.shape == (B, OUT_LAYER_SIZE), out.shape
    # bf16 weights + in-kernel bf16 cast of x -> loosened tolerance vs f32 ref.
    assert jnp.allclose(out, ref, atol=2e-2, rtol=2e-2), \
        float(jnp.abs(out - ref).max())

    # Non-tile-aligned batch with a small tile override: exercises the
    # pipelined multi-tile path with a ragged (OOB-masked) last tile,
    # no padding and no output slicing.
    B2 = 270
    x2 = jax.random.normal(kx2, (B2, DATA_DIM), dtype=jnp.float32)
    out2 = jax.block_until_ready(sequence_forward(x2, params, block_b=128))
    ref2 = reference_forward(x2, params)
    assert out2.shape == (B2, OUT_LAYER_SIZE), out2.shape
    assert jnp.allclose(out2, ref2, atol=2e-2, rtol=2e-2), \
        float(jnp.abs(out2 - ref2).max())

    print("KERNEL_OK")
</pallas_src>

<mosaic_0001>
module attributes {stable_mosaic.version = 11 : i64} {
  func.func @mlp_kernel(%arg0: i32, %arg1: memref<8x302xf32, #tpu.memory_space<vmem>>, %arg2: memref<302x64xbf16, #tpu.memory_space<vmem>>, %arg3: memref<1x64xf32, #tpu.memory_space<vmem>>, %arg4: memref<64x32xbf16, #tpu.memory_space<vmem>>, %arg5: memref<1x32xf32, #tpu.memory_space<vmem>>, %arg6: memref<32x16xbf16, #tpu.memory_space<vmem>>, %arg7: memref<1x16xf32, #tpu.memory_space<vmem>>, %arg8: memref<16x8xbf16, #tpu.memory_space<vmem>>, %arg9: memref<1x8xf32, #tpu.memory_space<vmem>>, %arg10: memref<8x8xf32, #tpu.memory_space<vmem>>) attributes {dimension_semantics = [#tpu.dimension_semantics<parallel>], iteration_bounds = array<i64: 1>, scalar_prefetch = 0 : i64, scratch_operands = 0 : i64, tpu.core_type = #tpu.core_type<tc>, window_params = [{transform_indices = @transform_0, window_bounds = array<i64: 8, 302>}, {pipeline_mode = #tpu.pipeline_mode<synchronous>, transform_indices = @transform_1, window_bounds = array<i64: 302, 64>}, {pipeline_mode = #tpu.pipeline_mode<synchronous>, transform_indices = @transform_2, window_bounds = array<i64: 1, 64>}, {pipeline_mode = #tpu.pipeline_mode<synchronous>, transform_indices = @transform_3, window_bounds = array<i64: 64, 32>}, {pipeline_mode = #tpu.pipeline_mode<synchronous>, transform_indices = @transform_4, window_bounds = array<i64: 1, 32>}, {pipeline_mode = #tpu.pipeline_mode<synchronous>, transform_indices = @transform_5, window_bounds = array<i64: 32, 16>}, {pipeline_mode = #tpu.pipeline_mode<synchronous>, transform_indices = @transform_6, window_bounds = array<i64: 1, 16>}, {pipeline_mode = #tpu.pipeline_mode<synchronous>, transform_indices = @transform_7, window_bounds = array<i64: 16, 8>}, {pipeline_mode = #tpu.pipeline_mode<synchronous>, transform_indices = @transform_8, window_bounds = array<i64: 1, 8>}, {transform_indices = @transform_9, window_bounds = array<i64: 8, 8>}]} {
    %c0 = arith.constant 0 : index
    %c0_0 = arith.constant 0 : index
    %0 = vector.load %arg1[%c0, %c0_0] : memref<8x302xf32, #tpu.memory_space<vmem>>, vector<8x302xf32>
    %1 = arith.truncf %0 : vector<8x302xf32> to vector<8x302xbf16>
    %c0_1 = arith.constant 0 : index
    %c0_2 = arith.constant 0 : index
    %2 = vector.load %arg2[%c0_1, %c0_2] : memref<302x64xbf16, #tpu.memory_space<vmem>>, vector<302x64xbf16>
    %cst = arith.constant dense<0.000000e+00> : vector<8x64xf32>
    %3 = tpu.matmul %1, %2, %cst {dimension_numbers = #tpu.dot_dimension_numbers<[1], [0], [0], [1], [0, 0, 1, 1], [], []>} : vector<8x302xbf16>, vector<302x64xbf16>, vector<8x64xf32> -> vector<8x64xf32>
    %c0_3 = arith.constant 0 : index
    %c0_4 = arith.constant 0 : index
    %4 = vector.load %arg3[%c0_3, %c0_4] : memref<1x64xf32, #tpu.memory_space<vmem>>, vector<1x64xf32>
    %5 = vector.broadcast %4 : vector<1x64xf32> to vector<8x64xf32>
    %6 = arith.addf %3, %5 : vector<8x64xf32>
    %cst_5 = arith.constant 0.000000e+00 : f32
    %7 = vector.broadcast %cst_5 : f32 to vector<8x64xf32>
    %8 = arith.maximumf %6, %7 : vector<8x64xf32>
    %9 = arith.truncf %8 : vector<8x64xf32> to vector<8x64xbf16>
    %c0_6 = arith.constant 0 : index
    %c0_7 = arith.constant 0 : index
    %10 = vector.load %arg4[%c0_6, %c0_7] : memref<64x32xbf16, #tpu.memory_space<vmem>>, vector<64x32xbf16>
    %cst_8 = arith.constant dense<0.000000e+00> : vector<8x32xf32>
    %11 = tpu.matmul %9, %10, %cst_8 {dimension_numbers = #tpu.dot_dimension_numbers<[1], [0], [0], [1], [0, 0, 1, 1], [], []>} : vector<8x64xbf16>, vector<64x32xbf16>, vector<8x32xf32> -> vector<8x32xf32>
    %c0_9 = arith.constant 0 : index
    %c0_10 = arith.constant 0 : index
    %12 = vector.load %arg5[%c0_9, %c0_10] : memref<1x32xf32, #tpu.memory_space<vmem>>, vector<1x32xf32>
    %13 = vector.broadcast %12 : vector<1x32xf32> to vector<8x32xf32>
    %14 = arith.addf %11, %13 : vector<8x32xf32>
    %cst_11 = arith.constant 0.000000e+00 : f32
    %15 = vector.broadcast %cst_11 : f32 to vector<8x32xf32>
    %16 = arith.maximumf %14, %15 : vector<8x32xf32>
    %17 = arith.truncf %16 : vector<8x32xf32> to vector<8x32xbf16>
    %c0_12 = arith.constant 0 : index
    %c0_13 = arith.constant 0 : index
    %18 = vector.load %arg6[%c0_12, %c0_13] : memref<32x16xbf16, #tpu.memory_space<vmem>>, vector<32x16xbf16>
    %cst_14 = arith.constant dense<0.000000e+00> : vector<8x16xf32>
    %19 = tpu.matmul %17, %18, %cst_14 {dimension_numbers = #tpu.dot_dimension_numbers<[1], [0], [0], [1], [0, 0, 1, 1], [], []>} : vector<8x32xbf16>, vector<32x16xbf16>, vector<8x16xf32> -> vector<8x16xf32>
    %c0_15 = arith.constant 0 : index
    %c0_16 = arith.constant 0 : index
    %20 = vector.load %arg7[%c0_15, %c0_16] : memref<1x16xf32, #tpu.memory_space<vmem>>, vector<1x16xf32>
    %21 = vector.broadcast %20 : vector<1x16xf32> to vector<8x16xf32>
    %22 = arith.addf %19, %21 : vector<8x16xf32>
    %cst_17 = arith.constant 0.000000e+00 : f32
    %23 = vector.broadcast %cst_17 : f32 to vector<8x16xf32>
    %24 = arith.maximumf %22, %23 : vector<8x16xf32>
    %25 = arith.truncf %24 : vector<8x16xf32> to vector<8x16xbf16>
    %c0_18 = arith.constant 0 : index
    %c0_19 = arith.constant 0 : index
    %26 = vector.load %arg8[%c0_18, %c0_19] : memref<16x8xbf16, #tpu.memory_space<vmem>>, vector<16x8xbf16>
    %cst_20 = arith.constant dense<0.000000e+00> : vector<8x8xf32>
    %27 = tpu.matmul %25, %26, %cst_20 {dimension_numbers = #tpu.dot_dimension_numbers<[1], [0], [0], [1], [0, 0, 1, 1], [], []>} : vector<8x16xbf16>, vector<16x8xbf16>, vector<8x8xf32> -> vector<8x8xf32>
    %c0_21 = arith.constant 0 : index
    %c0_22 = arith.constant 0 : index
    %28 = vector.load %arg9[%c0_21, %c0_22] : memref<1x8xf32, #tpu.memory_space<vmem>>, vector<1x8xf32>
    %29 = vector.broadcast %28 : vector<1x8xf32> to vector<8x8xf32>
    %30 = arith.addf %27, %29 : vector<8x8xf32>
    %cst_23 = arith.constant 0.000000e+00 : f32
    %31 = vector.broadcast %cst_23 : f32 to vector<8x8xf32>
    %32 = arith.maximumf %30, %31 : vector<8x8xf32>
    %c0_24 = arith.constant 0 : index
    %c0_25 = arith.constant 0 : index
    %33 = vector.load %arg10[%c0_24, %c0_25] : memref<8x8xf32, #tpu.memory_space<vmem>>, vector<8x8xf32>
    tpu.vector_store %arg10[%c0_24, %c0_25], %32 {strides = array<i32>} : memref<8x8xf32, #tpu.memory_space<vmem>>, vector<8x8xf32>,
    return
  }
  func.func @transform_0(%arg0: i32) -> (i32, i32) {
    %c0_i32 = arith.constant 0 : i32
    %c0_i32_0 = arith.constant 0 : i32
    return %arg0, %c0_i32 : i32, i32
  }
  func.func @transform_1(%arg0: i32) -> (i32, i32) {
    %c0_i32 = arith.constant 0 : i32
    %c0_i32_0 = arith.constant 0 : i32
    %c0_i32_1 = arith.constant 0 : i32
    return %c0_i32, %c0_i32_0 : i32, i32
  }
  func.func @transform_2(%arg0: i32) -> (i32, i32) {
    %c0_i32 = arith.constant 0 : i32
    %c0_i32_0 = arith.constant 0 : i32
    %c0_i32_1 = arith.constant 0 : i32
    return %c0_i32, %c0_i32_0 : i32, i32
  }
  func.func @transform_3(%arg0: i32) -> (i32, i32) {
    %c0_i32 = arith.constant 0 : i32
    %c0_i32_0 = arith.constant 0 : i32
    %c0_i32_1 = arith.constant 0 : i32
    return %c0_i32, %c0_i32_0 : i32, i32
  }
  func.func @transform_4(%arg0: i32) -> (i32, i32) {
    %c0_i32 = arith.constant 0 : i32
    %c0_i32_0 = arith.constant 0 : i32
    %c0_i32_1 = arith.constant 0 : i32
    return %c0_i32, %c0_i32_0 : i32, i32
  }
  func.func @transform_5(%arg0: i32) -> (i32, i32) {
    %c0_i32 = arith.constant 0 : i32
    %c0_i32_0 = arith.constant 0 : i32
    %c0_i32_1 = arith.constant 0 : i32
    return %c0_i32, %c0_i32_0 : i32, i32
  }
  func.func @transform_6(%arg0: i32) -> (i32, i32) {
    %c0_i32 = arith.constant 0 : i32
    %c0_i32_0 = arith.constant 0 : i32
    %c0_i32_1 = arith.constant 0 : i32
    return %c0_i32, %c0_i32_0 : i32, i32
  }
  func.func @transform_7(%arg0: i32) -> (i32, i32) {
    %c0_i32 = arith.constant 0 : i32
    %c0_i32_0 = arith.constant 0 : i32
    %c0_i32_1 = arith.constant 0 : i32
    return %c0_i32, %c0_i32_0 : i32, i32
  }
  func.func @transform_8(%arg0: i32) -> (i32, i32) {
    %c0_i32 = arith.constant 0 : i32
    %c0_i32_0 = arith.constant 0 : i32
    %c0_i32_1 = arith.constant 0 : i32
    return %c0_i32, %c0_i32_0 : i32, i32
  }
  func.func @transform_9(%arg0: i32) -> (i32, i32) {
    %c0_i32 = arith.constant 0 : i32
    %c0_i32_0 = arith.constant 0 : i32
    return %arg0, %c0_i32 : i32, i32
  }
}

</mosaic_0001>

<bundles_post_ra>
// kernel: tpu_custom_call.1
= control target key start
LH: loop header
LB: loop body
LE: loop exit
PB: predicated region body
PF: predicated region fallthrough
CT: control target
= control target key end

     0   :  { %vm199_vm0 = vcmask 1046528   ;;  %s707_s0 = inlined_call_operand.vmem [shape: f32[8,302], index: 0, kind: input, shape index: {}]   ;;  %s708_s1 = inlined_call_operand.vmem [shape: bf16[302,64], index: 1, kind: input, shape index: {}]   ;;  %s709_s2 = inlined_call_operand.vmem [shape: f32[1,64], index: 2, kind: input, shape index: {}]   ;;  %s710_s3 = inlined_call_operand.vmem [shape: bf16[64,32], index: 3, kind: input, shape index: {}]   ;;  %s711_s4 = inlined_call_operand.vmem [shape: f32[1,32], index: 4, kind: input, shape index: {}]   ;;  %s712_s5 = inlined_call_operand.vmem [shape: bf16[32,16], index: 5, kind: input, shape index: {}]   ;;  %s713_s6 = inlined_call_operand.vmem [shape: f32[1,16], index: 6, kind: input, shape index: {}]   ;;  %s714_s7 = inlined_call_operand.vmem [shape: bf16[16,8], index: 7, kind: input, shape index: {}]   ;;  %s715_s8 = inlined_call_operand.vmem [shape: f32[1,8], index: 8, kind: input, shape index: {}]   ;;  %s716_s9 = inlined_call_operand.hbm [shape: f32[8,8], index: 9, kind: output, shape index: {}]  }
   0x1   :  { %v501_v0 = vld [vmem:[%s708_s1 + $0x38] sm:$0xff]  ;;  %v500_v2 = vld [vmem:[%s708_s1 + $0x30] sm:$0xff]  ;;  %v499_v8 = vld [vmem:[%s708_s1 + $0x28] sm:$0xff] }
   0x2   :  { %v509_v1 = vld [vmem:[%s708_s1 + $0x78] sm:$0xff]  ;;  %203 = vmatpush.bf16.msra.mxu0 %v501_v0  ;;  %v508_v3 = vld [vmem:[%s708_s1 + $0x70] sm:$0xff]  ;;  %v507_v9 = vld [vmem:[%s708_s1 + $0x68] sm:$0xff] }
   0x3   :  { %216 = vmatpush.bf16.msra.mxu1 %v509_v1  ;;  %v460_v4 = vld [vmem:[%s708_s1 + $0x90] sm:$0xf]  ;;  %v512_v5 = vld [vmem:[%s708_s1 + $0x90] sm:$0x70]  ;;  %v511_v10 = vld [vmem:[%s708_s1 + $0x88] sm:$0xff] }
   0x4   :  { %v461_v6 = vor.u32 %v512_v5, %v460_v4 }
   0x6   :  { %v201_v7 = vsel %vm199_vm0, %v461_v6, 0  ;;  %204 = vmatpush.bf16.msra.mxu0 %v500_v2 }
   0x7   :  { %217 = vmatpush.bf16.msra.mxu1 %v508_v3  ;;  %234 = vmatpush.bf16.msra.mxu2 %v201_v7 }
   0x8   :  { %14 = vsyncpa [#allocation3], 0  ;;  %v498_v11 = vld [vmem:[%s708_s1 + $0x20] sm:$0xff]  ;;  %v36_v14 = vld [vmem:[%s707_s0 + $0x10] sm:$0xff]  ;;  %vm195_vm1 = vcmask 375808   ;;  %vm280_vm2 = vcmask 523264  }
   0x9   :  { %v506_v12 = vld [vmem:[%s708_s1 + $0x60] sm:$0xff]  ;;  %v497_v15 = vld [vmem:[%s708_s1 + $0x18] sm:$0xff]  ;;  %v39_v17 = vpack.c.bf16 %v36_v14, %v36_v14  ;;  %v496_v18 = vld [vmem:[%s708_s1 + $0x10] sm:$0xff]  ;;  %vm319_vm3 = vcmask 261120   ;;  %vm350_vm4 = vcmask 130048   ;;  %s551_s28 = smov [#allocation2]  }
   0xa   :  { %205 = vmatpush.bf16.msra.mxu0 %v499_v8  ;;  %v510_v13 = vld [vmem:[%s708_s1 + $0x80] sm:$0xff]  ;;  %v505_v16 = vld [vmem:[%s708_s1 + $0x58] sm:$0xff]  ;;  %v504_v19 = vld [vmem:[%s708_s1 + $0x50] sm:$0xff]  ;;  %s375_s29 = sshll.u32 %s551_s28, 4  ;;  %s377_s11 = sshll.u32 %s716_s9, 4  ;;  %vm368_vm5 = vcmask 64512   ;;  %s376_s29 = int_to_ptr.vmem [resolvable:$true] %s375_s29  ;;  %s378_s11 = int_to_ptr.hbm [resolvable:$true] %s377_s11 }
   0xb   :  { %218 = vmatpush.bf16.msra.mxu1 %v507_v9  ;;  %235 = vmatpush.bf16.msra.mxu2 %v511_v10  ;;  %v495_v20 = vld [vmem:[%s708_s1 + $0x8] sm:$0xff]  ;;  %v494_v22 = vld [vmem:[%s708_s1] sm:$0xff]  ;;  %v516_v28 = vld [vmem:[%s710_s3 + $0x18] sm:$0xff] }
   0xc   :  { %v503_v21 = vld [vmem:[%s708_s1 + $0x48] sm:$0xff]  ;;  %v502_v23 = vld [vmem:[%s708_s1 + $0x40] sm:$0xff]  ;;  %288 = vmatpush.bf16.msra.mxu3 %v516_v28  ;;  %v515_v29 = vld [vmem:[%s710_s3 + $0x10] sm:$0xff] }
   0xd   :  { %v34_v24 = vld [vmem:[%s707_s0] sm:$0xff]  ;;  %v35_v25 = vld [vmem:[%s707_s0 + $0x8] sm:$0xff] }
   0xe   :  { %206 = vmatpush.bf16.msra.mxu0 %v498_v11  ;;  %v37_v26 = vpack.c.bf16 %v34_v24, %v34_v24  ;;  %v38_v27 = vpack.c.bf16 %v35_v25, %v35_v25  ;;  %v514_v30 = vld [vmem:[%s710_s3 + $0x8] sm:$0xff]  ;;  %v513_v31 = vld [vmem:[%s710_s3] sm:$0xff] }
   0xf   :  { %219 = vmatpush.bf16.msra.mxu1 %v506_v12  ;;  %236 = vmatpush.bf16.msra.mxu2 %v510_v13  ;;  %v518_v32 = vld [vmem:[%s712_s5 + $0x8] sm:$0xff]  ;;  %v517_v33 = vld [vmem:[%s712_s5] sm:$0xff] }
  0x10   :  { %289 = vmatpush.bf16.msra.mxu3 %v515_v29  ;;  %v521_v35 = vld [vmem:[%s709_s2] ss:$0 sm:$0xff] }
  0x11   :  { %v519_v46 = vld [vmem:[%s714_s7] sm:$0xff] }
  0x12   :  { %207 = vmatpush.bf16.msra.mxu0 %v497_v15  ;;  %462 = vmatmul.msk.bf16.vlgmr.msra.gmra.mxu2 %vm195_vm1, %v39_v17  ;;  %v522_v47 = vld [vmem:[%s711_s4] ss:$0 sm:$0xff] }
  0x13   :  { %220 = vmatpush.bf16.msra.mxu1 %v505_v16  ;;  %329 = vmatpush.bf16.msrb.mxu2 %v518_v32  ;;  %v523_v53 = vld [vmem:[%s713_s6] ss:$0 sm:$0xff] }
  0x14   :  { %290 = vmatpush.bf16.msra.mxu3 %v514_v30  ;;  %v524_v59 = vld [vmem:[%s715_s8] ss:$0 sm:$0xff] }
  0x16   :  { %208 = vmatpush.bf16.msra.mxu0 %v496_v18 }
  0x17   :  { %221 = vmatpush.bf16.msra.mxu1 %v504_v19  ;;  %330 = vmatpush.bf16.msrb.mxu2 %v517_v33 }
  0x18   :  { %291 = vmatpush.bf16.msra.mxu3 %v513_v31 }
  0x1a   :  { %209 = vmatpush.bf16.msra.mxu0 %v495_v20 }
  0x1b   :  { %222 = vmatpush.bf16.msra.mxu1 %v503_v21 }
  0x1c   :  { %361 = vmatpush.bf16.msrb.mxu3 %v519_v46 }
  0x1e   :  { %210 = vmatpush.bf16.msra.mxu0 %v494_v22 }
  0x1f   :  { %223 = vmatpush.bf16.msra.mxu1 %v502_v23 }
  0x21   :  { %211 = vmatmul.bf16.vlgmr.msra.gmra.mxu0 %v37_v26 }
  0x22   :  { %224 = vmatmul.bf16.vlgmr.msra.gmra.mxu1 %v38_v27 }
  0x95   :  { %v238_v34 = vpop.f32.mrf.mxu2 }
  0x9d   :  { %v240_v39 = vpop.f32.mrf.mxu2 }
  0x9e   :  { %v212_v36 = vpop.f32.mrf.mxu0 }
  0x9f   :  { %v225_v37 = vpop.f32.mrf.mxu1  ;;  %v213_v38 = vadd.f32 %v521_v35, %v212_v36 }
  0xa1   :  { %v226_v40 = vadd.f32 %v225_v37, %v213_v38 }
  0xa3   :  { %v239_v41 = vadd.f32 %v238_v34, %v226_v40 }
  0xa5   :  { %v242_v42 = vmax.f32 %v239_v41, 0.0 }
  0xa6   :  { %v214_v43 = vpop.f32.mrf.mxu0 }
  0xa7   :  { %v227_v44 = vpop.f32.mrf.mxu1  ;;  %v243_v45 = vpack.c.bf16 %v242_v42, %v242_v42 }
  0xa9   :  { %479 = vmatmul.msk.bf16.vlgmr.msra.gmra.mxu3 %vm280_vm2, %v243_v45 }
 0x12c   :  { %v293_v48 = vpop.f32.mrf.mxu3 }
 0x12d   :  { %v294_v49 = vadd.f32 %v522_v47, %v293_v48 }
 0x12f   :  { %v297_v50 = vmax.f32 %v294_v49, 0.0 }
 0x131   :  { %v298_v51 = vpack.c.bf16 %v297_v50, %v297_v50 }
 0x133   :  { %488 = vmatmul.msk.bf16.vlgmr.msrb.gmra.mxu2 %vm319_vm3, %v298_v51 }
 0x134   :  { %v295_v52 = vpop.f32.mrf.mxu3 }
 0x1b6   :  { %v332_v54 = vpop.f32.mrf.mxu2 }
 0x1b7   :  { %v333_v55 = vadd.f32 %v523_v53, %v332_v54 }
 0x1b9   :  { %v336_v56 = vmax.f32 %v333_v55, 0.0 }
 0x1bb   :  { %v337_v57 = vpack.c.bf16 %v336_v56, %v336_v56 }
 0x1bd   :  { %493 = vmatmul.msk.bf16.vlgmr.msrb.gmra.mxu3 %vm350_vm4, %v337_v57 }
 0x1be   :  { %v334_v58 = vpop.f32.mrf.mxu2 }
 0x240   :  { %v363_v60 = vpop.f32.mrf.mxu3 }
 0x241   :  { %v364_v61 = vadd.f32 %v524_v59, %v363_v60 }
 0x243   :  { %v367_v62 = vmax.f32 %v364_v61, 0.0 }
 0x245   :  { %369 = vst.msk [vmem:[#allocation2] sm:$0xff] %vm368_vm5, %v367_v62 }
 0x246   :  { %380 = dma.vmem_to_hbm [thread:$0]  %s376_s29, 128, %s378_s11, [#allocation3]  }
 0x248   :  { %v365_v63 = vpop.f32.mrf.mxu3 }
 0x249   :  { %549 = dma.done.wait [#allocation3], 128  }
 0x24a   :  { %550 = vsyncadd [#allocation3], 4294967168 }
 0x24b   :  { %385 = vsyncpa [#allocation3], 1 }

</bundles_post_ra>
